<compile_context>
chip_gen: v7x
topology: tpu7x:2x2x1
jax: 0.10.0
libtpu: 0.0.40
codegen_flags: <defaults>
</compile_context>

<pallas_src>
import functools

import jax
import jax.numpy as jnp
from jax.experimental import pallas as pl
from jax.experimental.pallas import tpu as pltpu


def _round_up(a, b):
    return ((a + b - 1) // b) * b


# ---------------------------------------------------------------------------
# Kernels
# ---------------------------------------------------------------------------
def _linear_relu_kernel(x_ref, w_ref, b_ref, o_ref):
    # Whole-K block: fused matmul (bf16 operands, f32 accumulation) + bias +
    # ReLU. x arrives as f32 and is cast in-register; epilogue stays f32
    # (v5e VPU has no bf16 ALU path), cast only at the store.
    x = x_ref[...].astype(jnp.bfloat16)
    acc = jnp.dot(x, w_ref[...], preferred_element_type=jnp.float32)
    o_ref[...] = jnp.maximum(acc + b_ref[...], 0.0).astype(o_ref.dtype)


def _linear_relu_acc_kernel(x_ref, w_ref, b_ref, o_ref, acc_ref):
    # K-tiled reduction: accumulate in an f32 VMEM scratch, finalize (bias +
    # ReLU + cast) on the last K step.
    k = pl.program_id(2)

    @pl.when(k == 0)
    def _init():
        acc_ref[...] = jnp.zeros_like(acc_ref)

    x = x_ref[...].astype(jnp.bfloat16)
    acc_ref[...] += jnp.dot(x, w_ref[...], preferred_element_type=jnp.float32)

    @pl.when(k == pl.num_programs(2) - 1)
    def _finalize():
        o_ref[...] = jnp.maximum(acc_ref[...] + b_ref[...],
                                 0.0).astype(o_ref.dtype)


# ---------------------------------------------------------------------------
# One-time parameter preparation (call once, outside the per-step path)
# ---------------------------------------------------------------------------
def prepare_decoder_params(weight_t, bias):
    """Pad output columns to a multiple of 128 (lane-dense) and cast W to bf16.

    weight_t: (input_dim, output_dim) f32 -- torch Linear weight, transposed.
    bias:     (output_dim,) f32
    Returns (w_bf16 (K, n_pad), bias_f32 (1, n_pad)).
    """
    k_dim, n = weight_t.shape
    del k_dim
    n_pad = _round_up(n, 128)
    w, b = weight_t, bias
    if n_pad != n:
        w = jnp.pad(w, ((0, 0), (0, n_pad - n)))
        b = jnp.pad(b, ((0, n_pad - n),))
    return w.astype(jnp.bfloat16), b.reshape(1, n_pad).astype(jnp.float32)


# ---------------------------------------------------------------------------
# Tiling / VMEM policy
# ---------------------------------------------------------------------------
def _tpu_generation():
    try:
        kind = jax.devices()[0].device_kind.lower()
    except Exception:  # pragma: no cover - defensive
        return 6
    for g in (7, 6, 5):
        if "v%d" % g in kind:
            return g
    return 6


def _select_tiles(m_rows, k_dim, n_pad, out_bytes, gen, tile_m_req):
    # VMEM caps: v7x has only 64 MiB physical -> never ask for more than
    # ~48 MiB; v5e/v6e (128 MiB) can go up to ~96 MiB.
    cap = (48 << 20) if gen >= 7 else (96 << 20)
    block_budget = int(cap * 0.72)

    if tile_m_req is None:
        tile_m_req = 512 if gen >= 7 else 1024
    tile_m = min(_round_up(tile_m_req, 8), _round_up(m_rows, 8))

    # N / K tile candidates (descending); they divide n_pad / k_dim exactly.
    n_cands = [n_pad] + [c for c in (4096, 2048, 1024, 512, 256, 128)
                         if c < n_pad and n_pad % c == 0]
    k_cands = [k_dim] + [c for c in (2048, 1024, 512, 256, 128)
                         if c < k_dim and k_dim % c == 0]

    # Prefer a resident weight (whole K, whole N -> grid-invariant W block,
    # DMA'd once) when its double-buffered footprint fits comfortably.
    w_resident_limit = (12 << 20) if gen >= 7 else (32 << 20)
    if 2 * k_dim * n_pad * 2 <= w_resident_limit:
        ni, ki = 0, 0
    else:
        ni = next((i for i, c in enumerate(n_cands) if c <= 512),
                  len(n_cands) - 1)
        ki = next((i for i, c in enumerate(k_cands) if c <= 2048),
                  len(k_cands) - 1)

    def est(tm, tn, tk):
        e = (2 * tm * tk * 4            # x (f32), double-buffered
             + 2 * tk * tn * 2          # W (bf16), double-buffered
             + 2 * tn * 4               # bias (f32), double-buffered
             + 2 * tm * tn * out_bytes)  # out, double-buffered
        if tk < k_dim:
            e += tm * tn * 4            # f32 accumulator scratch
        return e

    # Shrink (M first, then N, then K) until the block working set fits.
    while est(tile_m, n_cands[ni], k_cands[ki]) > block_budget:
        if tile_m > 256:
            tile_m = _round_up(tile_m // 2, 8)
        elif ni + 1 < len(n_cands):
            ni += 1
        elif ki + 1 < len(k_cands):
            ki += 1
        elif tile_m > 8:
            tile_m = _round_up(tile_m // 2, 8)
        else:
            break

    tile_n, tile_k = n_cands[ni], k_cands[ki]

    # v7x has 2 TensorCores: ensure the parallel axes expose >= 2 blocks for
    # small-M decode so both cores get work (splitting N is traffic-neutral).
    m_tiles = pl.cdiv(m_rows, tile_m)
    if gen >= 7 and m_tiles == 1 and n_pad >= 256 and tile_n == n_pad \
            and len(n_cands) > 1:
        tile_n = n_cands[1]

    vmem_limit = int(min(cap, max(32 << 20,
                                  est(tile_m, tile_n, tile_k) + (8 << 20))))
    return tile_m, tile_n, tile_k, vmem_limit


# ---------------------------------------------------------------------------
# Forward
# ---------------------------------------------------------------------------
@functools.partial(
    jax.jit,
    static_argnames=("input_dim", "output_dim", "out_dtype", "trim_output",
                     "tile_m"))
def vae_decoder_forward(inputs, w_prepared, b_prepared, *, input_dim,
                        output_dim, out_dtype=jnp.float32, trim_output=True,
                        tile_m=None):
    """Pallas implementation of VAEDecoder.forward.

    inputs:     any shape whose trailing dims flatten to input_dim per row
                (mirrors torch.reshape(inputs, (-1, input_dim)))
    w_prepared: (input_dim, n_pad) bf16   from prepare_decoder_params
    b_prepared: (1, n_pad) f32            from prepare_decoder_params
    out_dtype:  jnp.float32 (torch-matching, default) or jnp.bfloat16
                (halves output writeback; small extra quantization).
    trim_output: if False, return the lane-dense padded (M, n_pad) buffer and
                let the consumer slice lazily (avoids an extra HBM pass).
    """
    x = jnp.reshape(inputs, (-1, input_dim))
    if x.dtype != jnp.float32:
        x = x.astype(jnp.float32)
    m = x.shape[0]

    k_dim, n_pad = w_prepared.shape
    assert k_dim == input_dim
    out_bytes = jnp.dtype(out_dtype).itemsize

    gen = _tpu_generation()
    tile_m_eff, tile_n, tile_k, vmem_limit = _select_tiles(
        m, input_dim, n_pad, out_bytes, gen, tile_m)

    m_tiles = pl.cdiv(m, tile_m_eff)      # ragged trailing block is masked
    n_tiles = n_pad // tile_n
    k_tiles = input_dim // tile_k
    grid = (m_tiles, n_tiles, k_tiles)

    in_specs = [
        pl.BlockSpec((tile_m_eff, tile_k), lambda i, j, kk: (i, kk)),  # x
        pl.BlockSpec((tile_k, tile_n), lambda i, j, kk: (kk, j)),      # W
        pl.BlockSpec((1, tile_n), lambda i, j, kk: (0, j)),            # bias
    ]
    out_spec = pl.BlockSpec((tile_m_eff, tile_n), lambda i, j, kk: (i, j))

    if k_tiles == 1:
        kernel = _linear_relu_kernel
        scratch_shapes = ()
    else:
        kernel = _linear_relu_acc_kernel
        scratch_shapes = [pltpu.VMEM((tile_m_eff, tile_n), jnp.float32)]

    cost = pl.CostEstimate(
        flops=2 * m * input_dim * n_pad,
        transcendentals=0,
        bytes_accessed=(m * input_dim * 4          # x (f32) read
                        + input_dim * n_pad * 2    # W (bf16) read
                        + n_pad * 4                # bias read
                        + m * n_pad * out_bytes))  # output write

    out = pl.pallas_call(
        kernel,
        out_shape=jax.ShapeDtypeStruct((m, n_pad), out_dtype),
        grid=grid,
        in_specs=in_specs,
        out_specs=out_spec,
        scratch_shapes=scratch_shapes,
        compiler_params=pltpu.CompilerParams(
            dimension_semantics=("parallel", "parallel", "arbitrary"),
            vmem_limit_bytes=vmem_limit),
        cost_estimate=cost,
    )(x, w_prepared, b_prepared)

    if trim_output and n_pad != output_dim:
        # Exact torch-matching shape; pass trim_output=False to skip the
        # extra HBM pass and slice lazily at the consumer instead.
        out = out[:, :output_dim]
    return out


def init_params(key, input_dim, output_dim):
    """Deterministic init matching torch.nn.Linear (weight stored transposed)."""
    kw, kb = jax.random.split(key)
    bound = 1.0 / jnp.sqrt(jnp.float32(input_dim))
    weight_t = jax.random.uniform(
        kw, (input_dim, output_dim), jnp.float32, minval=-bound, maxval=bound)
    bias = jax.random.uniform(
        kb, (output_dim,), jnp.float32, minval=-bound, maxval=bound)
    return weight_t, bias


if __name__ == "__main__":
    key = jax.random.PRNGKey(0)
    k_in, k_param = jax.random.split(key)

    input_dim, output_dim = 32, 64
    # inputs shaped (seq=4, batch=2, input_dim) -> flattened to (8, input_dim)
    inputs = jax.random.normal(k_in, (4, 2, input_dim), jnp.float32)

    weight_t, bias = init_params(k_param, input_dim, output_dim)

    # One-time parameter prep (pad N to 128, cast W to bf16) -- NOT per step.
    w_prep, b_prep = prepare_decoder_params(weight_t, bias)

    out = vae_decoder_forward(
        inputs, w_prep, b_prep, input_dim=input_dim, output_dim=output_dim)
    out = jax.block_until_ready(out)

    # Reference checks. Documented numerics choice: MXU operands are bf16 with
    # f32 accumulation, so we check tightly against a bf16-quantized reference
    # and loosely against the exact f32 torch-equivalent Linear.
    x = inputs.reshape(-1, input_dim)
    xb = x.astype(jnp.bfloat16).astype(jnp.float32)
    wb = weight_t.astype(jnp.bfloat16).astype(jnp.float32)
    ref_bf16 = jnp.maximum(xb @ wb + bias, 0.0)
    ref_f32 = jnp.maximum(x @ weight_t + bias, 0.0)

    assert out.shape == (8, output_dim)
    assert jnp.allclose(out, ref_bf16, atol=1e-3, rtol=1e-3), \
        "mismatch vs bf16-quantized reference"
    assert jnp.allclose(out, ref_f32, atol=5e-2, rtol=5e-2), \
        "mismatch vs f32 reference"

    print("KERNEL_OK")
</pallas_src>

<mosaic_0001>
module attributes {stable_mosaic.version = 11 : i64} {
  func.func @_linear_relu_kernel(%arg0: i32, %arg1: i32, %arg2: i32, %arg3: memref<8x32xf32, #tpu.memory_space<vmem>>, %arg4: memref<32x128xbf16, #tpu.memory_space<vmem>>, %arg5: memref<1x128xf32, #tpu.memory_space<vmem>>, %arg6: memref<8x128xf32, #tpu.memory_space<vmem>>) attributes {dimension_semantics = [#tpu.dimension_semantics<parallel>, #tpu.dimension_semantics<parallel>, #tpu.dimension_semantics<arbitrary>], iteration_bounds = array<i64: 1, 1, 1>, scalar_prefetch = 0 : i64, scratch_operands = 0 : i64, tpu.core_type = #tpu.core_type<tc>, window_params = [{transform_indices = @transform_0, window_bounds = array<i64: 8, 32>}, {transform_indices = @transform_1, window_bounds = array<i64: 32, 128>}, {transform_indices = @transform_2, window_bounds = array<i64: 1, 128>}, {transform_indices = @transform_3, window_bounds = array<i64: 8, 128>}]} {
    %c0 = arith.constant 0 : index
    %c0_0 = arith.constant 0 : index
    %0 = vector.load %arg3[%c0, %c0_0] : memref<8x32xf32, #tpu.memory_space<vmem>>, vector<8x32xf32>
    %1 = arith.truncf %0 : vector<8x32xf32> to vector<8x32xbf16>
    %c0_1 = arith.constant 0 : index
    %c0_2 = arith.constant 0 : index
    %2 = vector.load %arg4[%c0_1, %c0_2] : memref<32x128xbf16, #tpu.memory_space<vmem>>, vector<32x128xbf16>
    %cst = arith.constant dense<0.000000e+00> : vector<8x128xf32>
    %3 = tpu.matmul %1, %2, %cst {dimension_numbers = #tpu.dot_dimension_numbers<[1], [0], [0], [1], [0, 0, 1, 1], [], []>} : vector<8x32xbf16>, vector<32x128xbf16>, vector<8x128xf32> -> vector<8x128xf32>
    %c0_3 = arith.constant 0 : index
    %c0_4 = arith.constant 0 : index
    %4 = vector.load %arg5[%c0_3, %c0_4] : memref<1x128xf32, #tpu.memory_space<vmem>>, vector<1x128xf32>
    %5 = vector.broadcast %4 : vector<1x128xf32> to vector<8x128xf32>
    %6 = arith.addf %3, %5 : vector<8x128xf32>
    %cst_5 = arith.constant 0.000000e+00 : f32
    %7 = vector.broadcast %cst_5 : f32 to vector<8x128xf32>
    %8 = arith.maximumf %6, %7 : vector<8x128xf32>
    %c0_6 = arith.constant 0 : index
    %c0_7 = arith.constant 0 : index
    %9 = vector.load %arg6[%c0_6, %c0_7] : memref<8x128xf32, #tpu.memory_space<vmem>>, vector<8x128xf32>
    tpu.vector_store %arg6[%c0_6, %c0_7], %8 {strides = array<i32>} : memref<8x128xf32, #tpu.memory_space<vmem>>, vector<8x128xf32>,
    return
  }
  func.func @transform_0(%arg0: i32, %arg1: i32, %arg2: i32) -> (i32, i32) {
    %c0_i32 = arith.constant 0 : i32
    return %arg0, %arg2 : i32, i32
  }
  func.func @transform_1(%arg0: i32, %arg1: i32, %arg2: i32) -> (i32, i32) {
    %c0_i32 = arith.constant 0 : i32
    return %arg2, %arg1 : i32, i32
  }
  func.func @transform_2(%arg0: i32, %arg1: i32, %arg2: i32) -> (i32, i32) {
    %c0_i32 = arith.constant 0 : i32
    %c0_i32_0 = arith.constant 0 : i32
    return %c0_i32, %arg1 : i32, i32
  }
  func.func @transform_3(%arg0: i32, %arg1: i32, %arg2: i32) -> (i32, i32) {
    %c0_i32 = arith.constant 0 : i32
    return %arg0, %arg1 : i32, i32
  }
}

</mosaic_0001>

<bundles_post_ra>
// kernel: vae_decoder_forward.1
= control target key start
LH: loop header
LB: loop body
LE: loop exit
PB: predicated region body
PF: predicated region fallthrough
CT: control target
= control target key end

     0   :  { %8 = vsyncpa [#allocation3], 0  ;;  %s298_s0 = inlined_call_operand.hbm [shape: f32[8,32], index: 0, kind: input, shape index: {}]   ;;  %s299_s1 = inlined_call_operand.hbm [shape: bf16[32,128], index: 1, kind: input, shape index: {}]   ;;  %s300_s2 = inlined_call_operand.vmem [shape: f32[1,128], index: 2, kind: input, shape index: {}]   ;;  %s301_s3 = inlined_call_operand.hbm [shape: f32[8,128], index: 3, kind: output, shape index: {}]  }
   0x1   :  { %9 = vsyncpa [#allocation6], 0 }
   0x2   :  { %10 = vsyncpa [#allocation4], 0  ;;  %s225_s12 = smov [#allocation2]   ;;  %s226_s14 = smov [#allocation5]  }
   0x3   :  { %s17_s13 = sshll.u32 %s225_s12, 4  ;;  %s26_s15 = sshll.u32 %s226_s14, 4  ;;  %s18_s13 = int_to_ptr.vmem [resolvable:$true] %s17_s13  ;;  %s252_s15 = int_to_ptr.vmem [resolvable:$true] %s26_s15 }
   0x4   :  { %s153_s18 = scalar_lea.hbm %s298_s0, 128 }
   0x5   :  { %p154_p0 = scmp.ne.s32.totalorder %s298_s0, %s153_s18  ;;  %p157_p1 = scmp.lt.u32.totalorder %s153_s18, %s298_s0 }
   0x7   :  { %p159_p2 = pnand %p157_p1, %p154_p0 }
   0x9   :  { %162 = shalt.err (!%p159_p2)
}
   0xa   :  { %s163_s23 = scalar_lea.vmem %s18_s13, 128  ;;  %p168_p4 = scmp.lt.s32.totalorder %s18_s13, %s18_s13 }
   0xb   :  { %p164_p3 = scmp.ne.s32.totalorder %s18_s13, %s163_s23  ;;  %p169_p5 = scmp.lt.s32.totalorder %s163_s23, %s163_s23 }
   0xd   :  { %p170_p6 = por %p169_p5, %p168_p4 }
   0xf   :  { %p171_p7 = pnand %p170_p6, %p164_p3 }
  0x11   :  { %174 = shalt.err (!%p171_p7)
}
  0x12   :  { %20 = dma.hbm_to_vmem [thread:$0]  %s298_s0, 128, %s18_s13, [#allocation3]  }
  0x13   :  { %s175_s28 = scalar_lea.hbm %s299_s1, 256 }
  0x14   :  { %p176_p8 = scmp.ne.s32.totalorder %s299_s1, %s175_s28  ;;  %p179_p9 = scmp.lt.u32.totalorder %s175_s28, %s299_s1 }
  0x16   :  { %p181_p10 = pnand %p179_p9, %p176_p8 }
  0x18   :  { %184 = shalt.err (!%p181_p10)
}
  0x19   :  { %s185_s6 = scalar_lea.vmem %s252_s15, 256  ;;  %p190_p12 = scmp.lt.s32.totalorder %s252_s15, %s252_s15 }
  0x1a   :  { %p186_p11 = scmp.ne.s32.totalorder %s252_s15, %s185_s6  ;;  %p191_p13 = scmp.lt.s32.totalorder %s185_s6, %s185_s6 }
  0x1c   :  { %p192_p0 = por %p191_p13, %p190_p12 }
  0x1e   :  { %p193_p1 = pnand %p192_p0, %p186_p11 }
  0x20   :  { %196 = shalt.err (!%p193_p1)
}
  0x21   :  { %s227_s0 = smov 64   ;;  %s228_s7 = smov 4  }
  0x22   :  { %32 = dma.hbm_to_vmem [thread:$0]  %s299_s1, 256, %s252_s15, [#allocation6], %s227_s0, %s227_s0, %s228_s7  }
  0x23   :  { %219 = dma.done.wait [#allocation3], 128  }
  0x24   :  { %220 = vsyncadd [#allocation3], 4294967168 }
  0x25   :  { %221 = dma.done.wait [#allocation6], 256  }
  0x26   :  { %222 = vsyncadd [#allocation6], 4294967040  ;;  %v229_v0 = vmov 0.0   ;;  %vm230_vm0 = vmmov 0   ;;  %v151_v1 = vld [vmem:[#allocation5] sm:$0xff]   ;;  %v152_v2 = vld [vmem:[#allocation5 + $0x8] sm:$0xff]  }
  0x27   :  { %136 = vmatprep.subr.bf16.mxu0 %v229_v0  ;;  %140 = vmatprep.mubr.msk.bf16.mxu0 %vm230_vm0, %v229_v0  ;;  %v42_v3 = vld [vmem:[#allocation2] sm:$0xff]  ;;  %vm67_vm1 = vcmask 261120   ;;  %s231_s1 = smov [#allocation7]  }
  0x28   :  { %137 = vmatpush3.bf16.msra.mxu0 %v151_v1  ;;  %v43_v4 = vpack.c.bf16 %v42_v3, %v42_v3  ;;  %v129_v5 = vld [vmem:[%s300_s2] ss:$0 sm:$0xff]  ;;  %s119_s12 = sshll.u32 %s231_s1, 4  ;;  %s120_s12 = int_to_ptr.vmem [resolvable:$true] %s119_s12 }
  0x29   :  { %138 = vmatprep.subr.bf16.mxu0 %v229_v0  ;;  %s197_s13 = scalar_lea.vmem %s120_s12, 128  ;;  %p202_p3 = scmp.lt.s32.totalorder %s120_s12, %s120_s12 }
  0x2a   :  { %p198_p2 = scmp.ne.s32.totalorder %s120_s12, %s197_s13  ;;  %p203_p4 = scmp.lt.s32.totalorder %s197_s13, %s197_s13 }
  0x2c   :  { %139 = vmatpush3.bf16.msra.mxu0 %v152_v2  ;;  %p204_p5 = por %p203_p4, %p202_p3 }
  0x2e   :  { %p205_p6 = pnand %p204_p5, %p198_p2 }
  0x2f   :  { %141 = vmatmul.mubr.msk.bf16.vlgmr.msra.gmra.mrb[0].mxu0 %vm67_vm1, %v43_v4 }
 0x102   :  { %v105_v6 = vpop.f32.mrb[0].mxu0 }
 0x103   :  { %v106_v7 = vadd.f32 %v129_v5, %v105_v6  ;;  %v142_v8 = vpop.f32.mrb[1].mxu0 }
 0x104   :  { %v108_v9 = vpop.f32.mrb[2].mxu0 }
 0x105   :  { %v111_v10 = vmax.f32 %v106_v7, 0.0  ;;  %v143_v11 = vpop.f32.mrb[3].mxu0 }
 0x107   :  { %112 = vst [vmem:[#allocation7] sm:$0xff] %v111_v10 }
 0x108   :  { %208 = shalt.err (!%p205_p6)
}
 0x109   :  { %s209_s2 = scalar_lea.hbm %s301_s3, 128 }
 0x10a   :  { %p210_p7 = scmp.ne.s32.totalorder %s301_s3, %s209_s2  ;;  %p213_p8 = scmp.lt.u32.totalorder %s209_s2, %s301_s3 }
 0x10c   :  { %p215_p9 = pnand %p213_p8, %p210_p7 }
 0x10e   :  { %218 = shalt.err (!%p215_p9)
}
 0x10f   :  { %122 = dma.vmem_to_hbm [thread:$0]  %s120_s12, 128, %s301_s3, [#allocation4]  }
 0x110   :  { %223 = dma.done.wait [#allocation4], 128  }
 0x111   :  { %224 = vsyncadd [#allocation4], 4294967168 }
 0x112   :  { %126 = vsyncpa [#allocation3], 1 }
 0x113   :  { %127 = vsyncpa [#allocation6], 1 }
 0x114   :  { %128 = vsyncpa [#allocation4], 1 }

</bundles_post_ra>
